<compile_context>
chip_gen: v6e
topology: v6e:2x2x1
jax: 0.10.0
libtpu: 0.0.40
codegen_flags: <defaults>
</compile_context>

<pallas_src>
import math
import jax
import jax.numpy as jnp
from jax.experimental import pallas as pl
from jax.experimental.pallas import tpu as pltpu


def _fc_kernel(x_ref, wt_ref, o_ref):
    # o = x @ weight.T, expressed as the canonical [tm,K] x [K,tn] MXU matmul on the
    # pre-transposed weight tile; accumulate in f32, cast to the output dtype.
    o_ref[...] = jnp.dot(
        x_ref[...], wt_ref[...], preferred_element_type=jnp.float32
    ).astype(o_ref.dtype)


def _round_up(x, m):
    return ((x + m - 1) // m) * m


def _pick_tn(n, max_tn=512):
    """Largest lane-aligned (multiple-of-128) divisor of n that is <= max_tn,
    preferring >= 2 blocks along N so v7x's second TensorCore gets work."""
    if n % 128 != 0:
        return n  # full-width block (BlockSpec allows full-extent dims)
    chosen = n
    for c in range(min(max_tn, n), 0, -128):
        if n % c == 0:
            chosen = c
            if n // c >= 2:
                return c
    return chosen


def fc_toeplitz_bernoulli_forward(x, weight, *, tm=None, tn=None,
                                  compute_dtype=jnp.bfloat16):
    """Deterministic forward: x @ weight.T.

    x:      (batch, in_features)
    weight: (out_features, in_features), square (in_features == out_features)
    Returns (batch, out_features) in x.dtype; matmul runs in `compute_dtype`
    with f32 accumulation.
    """
    M, K = x.shape
    N, K2 = weight.shape
    assert K == K2 and N == K, "in_features must equal out_features"

    out_dtype = x.dtype
    c_itemsize = jnp.dtype(compute_dtype).itemsize
    o_itemsize = jnp.dtype(out_dtype).itemsize
    sublane = 32 // c_itemsize  # 8 rows for f32, 16 for bf16

    if tm is None:
        tm = min(512, _round_up(M, sublane))
    tm = _round_up(tm, sublane)
    if tn is None:
        tn = _pick_tn(N)
    assert N % tn == 0
    assert tn == N or tn % 128 == 0, "tn must be lane-aligned (multiple of 128) or full N"

    # One-time layout plumbing outside the grid loop: cast + transpose the weight.
    x_c = x.astype(compute_dtype)
    wt_c = weight.T.astype(compute_dtype)  # (K, N)

    M_pad = _round_up(M, tm)
    if M_pad != M:
        x_c = jnp.pad(x_c, ((0, M_pad - M), (0, 0)))

    grid_n = N // tn
    grid_m = M_pad // tm
    # j (N tiles) outermost, i (batch tiles) innermost: each weight tile is DMA'd
    # once and reused for every batch tile.
    grid = (grid_n, grid_m)

    cost = pl.CostEstimate(
        flops=2 * M_pad * N * K,
        transcendentals=0,
        bytes_accessed=(grid_n * M_pad * K * c_itemsize   # x re-read per N tile
                        + K * N * c_itemsize              # weight read once
                        + M_pad * N * o_itemsize),        # output written once
    )

    # Double-buffered x / weight / out tiles.
    vmem_est = 2 * (tm * K * c_itemsize + K * tn * c_itemsize + tm * tn * o_itemsize)
    compiler_kwargs = dict(dimension_semantics=("parallel", "parallel"))
    if vmem_est > 12 * 1024 * 1024:
        compiler_kwargs["vmem_limit_bytes"] = int(min(64 * 1024 * 1024, 2 * vmem_est))

    out = pl.pallas_call(
        _fc_kernel,
        out_shape=jax.ShapeDtypeStruct((M_pad, N), out_dtype),
        grid_spec=pltpu.PrefetchScalarGridSpec(
            num_scalar_prefetch=0,
            grid=grid,
            in_specs=[
                pl.BlockSpec((tm, K), lambda j, i: (i, 0)),   # x row block (full K)
                pl.BlockSpec((K, tn), lambda j, i: (0, j)),   # weight.T column block
            ],
            out_specs=pl.BlockSpec((tm, tn), lambda j, i: (i, j)),
        ),
        compiler_params=pltpu.CompilerParams(**compiler_kwargs),
        cost_estimate=cost,
    )(x_c, wt_c)

    if M_pad != M:
        out = out[:M]
    return out


def init_params(key, in_features, out_features, gain=1.0):
    """Deterministic parameter init mirroring the module's __init__."""
    assert in_features == out_features
    # xavier_uniform_: U(-a, a), a = gain * sqrt(6 / (fan_in + fan_out))
    limit = gain * math.sqrt(6.0 / (in_features + out_features))
    weight = jax.random.uniform(
        key, (out_features, in_features), jnp.float32, minval=-limit, maxval=limit
    )
    # p_unsigmoided: zeros + 0.1 (unused in the deterministic forward path, kept for fidelity)
    p_unsigmoided = jnp.zeros((out_features, in_features), jnp.float32) + 0.1
    return weight, p_unsigmoided


if __name__ == "__main__":
    batch = 16
    features = 256  # in_features == out_features (asserted by the module)

    key = jax.random.PRNGKey(0)
    kw, kx = jax.random.split(key)

    weight, p_unsigmoided = init_params(kw, features, features)
    x = jax.random.normal(kx, (batch, features), jnp.float32)

    out = fc_toeplitz_bernoulli_forward(x, weight)
    out = jax.block_until_ready(out)

    # Reference in the same precision path as the kernel (bf16 inputs, f32 accumulate).
    xb = x.astype(jnp.bfloat16).astype(jnp.float32)
    wb = weight.astype(jnp.bfloat16).astype(jnp.float32)
    ref = xb @ wb.T

    assert out.shape == (batch, features)
    assert out.dtype == x.dtype
    assert jnp.allclose(out, ref, atol=1e-3, rtol=1e-3), float(jnp.max(jnp.abs(out - ref)))

    print("KERNEL_OK")
</pallas_src>

<mosaic_0001>
module attributes {stable_mosaic.version = 11 : i64} {
  func.func @_fc_kernel(%arg0: i32, %arg1: i32, %arg2: memref<16x256xbf16, #tpu.memory_space<vmem>>, %arg3: memref<256x128xbf16, #tpu.memory_space<vmem>>, %arg4: memref<16x128xf32, #tpu.memory_space<vmem>>) attributes {dimension_semantics = [#tpu.dimension_semantics<parallel>, #tpu.dimension_semantics<parallel>], iteration_bounds = array<i64: 2, 1>, scalar_prefetch = 0 : i64, scratch_operands = 0 : i64, tpu.core_type = #tpu.core_type<tc>, window_params = [{transform_indices = @transform_0, window_bounds = array<i64: 16, 256>}, {transform_indices = @transform_1, window_bounds = array<i64: 256, 128>}, {transform_indices = @transform_2, window_bounds = array<i64: 16, 128>}]} {
    %c0 = arith.constant 0 : index
    %c0_0 = arith.constant 0 : index
    %0 = vector.load %arg2[%c0, %c0_0] : memref<16x256xbf16, #tpu.memory_space<vmem>>, vector<16x256xbf16>
    %c0_1 = arith.constant 0 : index
    %c0_2 = arith.constant 0 : index
    %1 = vector.load %arg3[%c0_1, %c0_2] : memref<256x128xbf16, #tpu.memory_space<vmem>>, vector<256x128xbf16>
    %cst = arith.constant dense<0.000000e+00> : vector<16x128xf32>
    %2 = tpu.matmul %0, %1, %cst {dimension_numbers = #tpu.dot_dimension_numbers<[1], [0], [0], [1], [0, 0, 1, 1], [], []>} : vector<16x256xbf16>, vector<256x128xbf16>, vector<16x128xf32> -> vector<16x128xf32>
    %c0_3 = arith.constant 0 : index
    %c0_4 = arith.constant 0 : index
    %3 = vector.load %arg4[%c0_3, %c0_4] : memref<16x128xf32, #tpu.memory_space<vmem>>, vector<16x128xf32>
    tpu.vector_store %arg4[%c0_3, %c0_4], %2 {strides = array<i32>} : memref<16x128xf32, #tpu.memory_space<vmem>>, vector<16x128xf32>,
    return
  }
  func.func @transform_0(%arg0: i32, %arg1: i32) -> (i32, i32) {
    %c0_i32 = arith.constant 0 : i32
    %c0_i32_0 = arith.constant 0 : i32
    return %arg1, %c0_i32 : i32, i32
  }
  func.func @transform_1(%arg0: i32, %arg1: i32) -> (i32, i32) {
    %c0_i32 = arith.constant 0 : i32
    %c0_i32_0 = arith.constant 0 : i32
    return %c0_i32, %arg0 : i32, i32
  }
  func.func @transform_2(%arg0: i32, %arg1: i32) -> (i32, i32) {
    %c0_i32 = arith.constant 0 : i32
    return %arg1, %arg0 : i32, i32
  }
}

</mosaic_0001>

<bundles_post_ra>
// kernel: tpu_custom_call.1
= control target key start
LH: loop header
LB: loop body
LE: loop exit
PB: predicated region body
PF: predicated region fallthrough
CT: control target
= control target key end

     0   :  { %7 = vsyncpa [#allocation3], 0  ;;  %s1014_s0 = inlined_call_operand.hbm [shape: bf16[16,256], index: 0, kind: input, shape index: {}]   ;;  %s1015_s1 = inlined_call_operand.hbm [shape: bf16[256,256], index: 1, kind: input, shape index: {}]   ;;  %s1016_s2 = inlined_call_operand.hbm [shape: f32[16,256], index: 2, kind: output, shape index: {}]  }
   0x1   :  { %8 = vsyncpa [#allocation6], 0 }
   0x2   :  { %10 = vsyncpa [#allocation6 + $0x1], 0 }
   0x3   :  { %11 = vsyncpa [#allocation4], 0 }
   0x4   :  { %13 = vsyncpa [#allocation4 + $0x1], 0  ;;  %s817_s9 = smov 0   ;;  %s819_s10 = smov 0  }
   0x5   :  { %s821_s11 = smov 0   ;;  %s823_s12 = smov 0  }
   0x6   :  { %s825_s13 = smov 0   ;;  %s827_s14 = smov 0  }
   0x7 LB: > { %1021 = sst [smem:[#allocation11_spill]] %s790_s14  ;;  %s498_s15 = sadd.s32 4294967295, %s790_s14   ;;  %s790_s14 = sphi %s827_s14, %s1040_s14   ;;  %s786_s13 = sphi %s825_s13, %s1039_s13   ;;  %s782_s12 = sphi %s823_s12, %s1038_s12   ;;  %s778_s11 = sphi %s821_s11, %s1037_s11   ;;  %s774_s10 = sphi %s819_s10, %s1036_s10   ;;  %s770_s9 = sphi %s817_s9, %s1035_s9  }
   0x8   : > { %s499_s16 = sadd.s32 4294967294, %s790_s14   ;;  %p71_p0 = scmp.ne.s32.totalorder %s778_s11, %s774_s10 }
   0x9   : > { %p72_p1 = scmp.eq.s32.totalorder %s790_s14, 0  ;;  %p77_p2 = scmp.ne.s32.totalorder %s774_s10, %s770_s9 }
   0xa   : > { %p854_p3 = scmp.eq.s32.totalorder %s498_s15, 0  ;;  %p103_p5 = scmp.eq.s32.totalorder %s498_s15, 1 }
   0xb   : > { %p858_p4 = por %p72_p1, %p71_p0  ;;  %p109_p7 = scmp.eq.s32.totalorder %s499_s16, 1 }
   0xc   : > { %p864_p6 = por %p854_p3, %p77_p2  ;;  %p868_p8 = por %p103_p5, %p71_p0 }
   0xd   : > { %p500_p9 = scmp.ge.s32.totalorder %s790_s14, 1  ;;  %p873_p10 = por %p109_p7, %p77_p2 }
   0xe   : > { %s1024_s19 = scalar_select %p864_p6, 1, 0 }
   0xf   : > { %s1025_s20 = scalar_select %p868_p8, 1, 0 }
  0x10   : > { %s1026_s21 = scalar_select %p873_p10, 1, 0 }
  0x11   : > { %p116_p11 = scmp.lt.s32.totalorder %s790_s14, 3  ;;  %s792_s23 = smov [#allocation2]  }
  0x12   : > { %s132_s24 = sshll.u32 %s792_s23, 4  ;;  %p574_p1 = scmp.lt.s32.totalorder %s790_s14, 2  ;;  %s133_s24 = int_to_ptr.vmem [resolvable:$true] %s132_s24 }
  0x13   : > { %p878_p12 = pnand %p500_p9, %p116_p11  ;;  %s31_s27 = sadd.s32 1, %s786_s13 }
  0x14   : > { %p894_p2 = pnand %p574_p1, %p858_p4  ;;  %s663_s28 = scalar_lea.vmem %s133_s24, 256 }
  0x15   : > { %p561_p13 = pneg %p878_p12  ;;  %p664_p9 = scmp.ne.s32.totalorder %s133_s24, %s663_s28 }
  0x16   : > { %p671_p0 = scmp.lt.s32.totalorder %s133_s24, %s133_s24  ;;  %p672_p8 = scmp.lt.s32.totalorder %s663_s28, %s663_s28 }
  0x17   : > { %p888_p5 = pnand %p561_p13, %p854_p3 }
  0x18   : > { %p673_p6 = por %p672_p8, %p671_p0 }
  0x19   : > { %p654_p7 = pneg %p888_p5 }
  0x1b   : > { %p666_p11 = pnand %p664_p9, %p654_p7 }
  0x1d   : > { %p667_p10 = pneg %p666_p11 }
  0x1f   : > { %p674_p13 = pnand %p673_p6, %p667_p10 }
  0x21   : > { %677 = shalt.err (!%p674_p13)
}
  0x22   : > { %s793_s29 = smov 128   ;;  %s794_s30 = smov 8  }
  0x23   : > { %564 = dma.hbm_to_vmem [thread:$0]  (!%p888_p5), %s1014_s0, 256, %s133_s24, [#allocation3], %s793_s29, %s793_s29, %s794_s30  }
  0x24   : > { %p33_p4 = scmp.ge.s32.totalorder %s31_s27, 2  ;;  %s64_s5 = sadd.s32 1, %s778_s11 }
  0x25   : > { %s146_s6 = sand.u32 1, %s778_s11   ;;  %s504_s15 = sshll.u32 %s786_s13, 6 }
  0x26   : > { %s1042_s27 = smov (%p33_p4, %s31_s27), 0  ;;  %s503_s7 = sshll.u32 %s146_s6, 7 }
  0x27   : > { %s61_s8 = ssub.s32 %s786_s13, %s1042_s27  ;;  %s155_s23 = scalar_lea.hbm %s1015_s1, %s504_s15 }
  0x28   : > { %p62_p6 = scmp.eq.s32.totalorder %s61_s8, 0  ;;  %s150_s25 = scalar_lea.vmem [#allocation5], %s503_s7 }
  0x29   : > { %s156_s28 = sshll.u32 %s150_s25, 4  ;;  %s147_s24 = scalar_lea.sflag [#allocation6], %s146_s6  ;;  %s157_s28 = int_to_ptr.vmem [resolvable:$true] %s156_s28 }
  0x2a   : > { %s919_s14 = scalar_select %p62_p6, %s778_s11, %s64_s5  }
  0x2b   : > { %p680_p8 = pneg %p894_p2  ;;  %s691_s30 = scalar_lea.vmem %s157_s28, 2048 }
  0x2c   : > { %p692_p10 = scmp.ne.s32.totalorder %s157_s28, %s691_s30  ;;  %s795_s3 = smov [#allocation5]  }
  0x2d   : > { %s696_s4 = sshll.u32 %s795_s3, 4  ;;  %s697_s4 = int_to_ptr.vmem [resolvable:$false] %s696_s4 }
  0x2e   : > { %p694_p0 = pnand %p692_p10, %p680_p8  ;;  %s698_s8 = scalar_lea.vmem %s697_s4, 4096 }
  0x2f   : > { %p699_p5 = scmp.lt.s32.totalorder %s157_s28, %s697_s4  ;;  %p700_p7 = scmp.lt.s32.totalorder %s698_s8, %s691_s30 }
  0x30   : > { %p695_p1 = pneg %p694_p0 }
  0x31   : > { %p701_p9 = por %p700_p7, %p699_p5 }
  0x33   : > { %p702_p11 = pnand %p701_p9, %p695_p1 }
  0x35   : > { %705 = shalt.err (!%p702_p11)
}
  0x36   : > { %s796_s7 = smov 64   ;;  %s797_s5 = smov 4  }
  0x37   : > { %568 = dma.hbm_to_vmem [thread:$0]  (!%p894_p2), %s155_s23, 2048, %s157_s28, %s147_s24, %s793_s29, %s796_s7, %s797_s5  }
  0x38   : > { %168 = sbr.rel (%p878_p12) target bundleno = 315 (0x13b), region = 28 }
  0x3d   : > { %757 = dma.done.wait (%p854_p3), [#allocation3], 256  }
  0x3e   : > { %759 = vsyncadd (%p854_p3), [#allocation3], 4294967040  ;;  %s933_s6 = sand.u32 1, %s774_s10   ;;  %p1030_p2 = scmp.ne.s32.totalorder %s1024_s19, 0 }
  0x3f   : > { %s507_s15 = sshll.u32 %s933_s6, 7  ;;  %s175_s16 = scalar_lea.sflag [#allocation6], %s933_s6 }
  0x40   : > { %s937_s26 = scalar_lea.vmem [#allocation5], %s507_s15 }
  0x41   : > { %761 = dma.done.wait (%p1030_p2), %s175_s16, 2048  }
  0x42   : > { %763 = vsyncadd (%p1030_p2), %s175_s16, 4294965248  ;;  %v633_v0 = vld [vmem:[%s937_s26 + $0x78] sm:$0xff]   ;;  %v635_v2 = vld [vmem:[%s937_s26 + $0x70] sm:$0xff]   ;;  %s508_s17 = sshll.u32 %s933_s6, 4  ;;  %s528_s29 = sshll.u32 %s782_s12, 7 }
  0x43   : > { %v634_v1 = vld [vmem:[%s937_s26 + $0x38] sm:$0xff]   ;;  %531 = vmatprep.subr.bf16.mxu0 %v633_v0  ;;  %v636_v3 = vld [vmem:[%s937_s26 + $0x30] sm:$0xff]   ;;  %v637_v4 = vld [vmem:[%s937_s26 + $0x68] sm:$0xff]   ;;  %s198_s19 = scalar_lea.vmem [#allocation7], %s508_s17  ;;  %s966_s25 = scalar_lea.hbm %s1016_s2, %s528_s29 }
  0x44   : > { %532 = vmatpush3.bf16.msra.mxu0 %v634_v1  ;;  %v638_v5 = vld [vmem:[%s937_s26 + $0x28] sm:$0xff]   ;;  %v639_v6 = vld [vmem:[%s937_s26 + $0x60] sm:$0xff]   ;;  %v641_v8 = vld [vmem:[%s937_s26 + $0x58] sm:$0xff]   ;;  %s401_s22 = sshll.u32 %s198_s19, 4  ;;  %s386_s28 = scalar_lea.sflag [#allocation4], %s933_s6  ;;  %s961_s22 = int_to_ptr.vmem [resolvable:$true] %s401_s22 }
  0x45   : > { %533 = vmatprep.subr.bf16.mxu0 %v635_v2  ;;  %v640_v7 = vld [vmem:[%s937_s26 + $0x20] sm:$0xff]   ;;  %v642_v9 = vld [vmem:[%s937_s26 + $0x18] sm:$0xff]   ;;  %v643_v10 = vld [vmem:[%s937_s26 + $0x50] sm:$0xff]   ;;  %s706_s24 = scalar_lea.vmem %s961_s22, 256  ;;  %p1031_p12 = scmp.ne.s32.totalorder %s1025_s20, 0 }
  0x46   : > { %v651_v11 = vld [vmem:[#allocation2 + $0x4] ss:$8 sps:$4 sm:$0xff]   ;;  %v645_v13 = vld [vmem:[%s937_s26 + $0x48] sm:$0xff]   ;;  %v647_v15 = vld [vmem:[%s937_s26 + $0x40] sm:$0xff]   ;;  %p707_p3 = scmp.ne.s32.totalorder %s961_s22, %s706_s24  ;;  %s798_s12 = smov [#allocation7]  }
  0x47   : > { %v644_v12 = vld [vmem:[%s937_s26 + $0x10] sm:$0xff]   ;;  %374 = vmatprep.mubr.bf16.mxu0 %v651_v11  ;;  %v646_v14 = vld [vmem:[%s937_s26 + $0x8] sm:$0xff]   ;;  %v648_v16 = vld [vmem:[%s937_s26] sm:$0xff]   ;;  %s710_s30 = sshll.u32 %s798_s12, 4  ;;  %s711_s30 = int_to_ptr.vmem [resolvable:$false] %s710_s30 }
  0x48   : > { %534 = vmatpush3.bf16.msra.mxu0 %v636_v3  ;;  %v649_v17 = vld [vmem:[#allocation2] ss:$8 sps:$4 sm:$0xff]   ;;  %p708_p13 = pnand %p707_p3, %p1031_p12  ;;  %s712_s3 = scalar_lea.vmem %s711_s30, 512 }
  0x49   : > { %535 = vmatprep.subr.bf16.mxu0 %v637_v4  ;;  %p713_p6 = scmp.lt.s32.totalorder %s961_s22, %s711_s30  ;;  %p714_p8 = scmp.lt.s32.totalorder %s712_s3, %s706_s24 }
  0x4a   : > { %p709_p4 = pneg %p708_p13 }
  0x4b   : > { %p715_p10 = por %p714_p8, %p713_p6 }
  0x4c   : > { %536 = vmatpush3.bf16.msra.mxu0 %v638_v5 }
  0x4d   : > { %537 = vmatprep.subr.bf16.mxu0 %v639_v6  ;;  %p716_p0 = pnand %p715_p10, %p709_p4 }
  0x50   : > { %538 = vmatpush3.bf16.msra.mxu0 %v640_v7 }
  0x51   : > { %539 = vmatprep.subr.bf16.mxu0 %v641_v8 }
  0x54   : > { %540 = vmatpush3.bf16.msra.mxu0 %v642_v9 }
  0x55   : > { %541 = vmatprep.subr.bf16.mxu0 %v643_v10 }
  0x58   : > { %542 = vmatpush3.bf16.msra.mxu0 %v644_v12 }
  0x59   : > { %543 = vmatprep.subr.bf16.mxu0 %v645_v13 }
  0x5c   : > { %544 = vmatpush3.bf16.msra.mxu0 %v646_v14 }
  0x5d   : > { %545 = vmatprep.subr.bf16.mxu0 %v647_v15 }
  0x60   : > { %546 = vmatpush3.bf16.msra.mxu0 %v648_v16 }
  0x63   : > { %375 = vmatmul.mubr.bf16.vlgmr.msra.gmra.mxu0 %v649_v17 }
 0x123   : > { %v547_v18 = vpop.f32.mrf.mxu0 }
 0x125   : > { %v548_v19 = vpop.f32.mrf.mxu0 }
 0x126   : > { %v549_v20 = vadd.f32 %v548_v19, %v547_v18 }
 0x127   : > { %v550_v21 = vpop.f32.mrf.mxu0 }
 0x128   : > { %383 = vst [vmem:[%s198_s19] sm:$0xff] %v549_v20 }
 0x129   : > { %v551_v22 = vpop.f32.mrf.mxu0 }
 0x12a   : > { %v552_v23 = vadd.f32 %v551_v22, %v550_v21 }
 0x12c   : > { %384 = vst [vmem:[%s198_s19 + $0x8] sm:$0xff] %v552_v23 }
 0x12d   : > { %719 = shalt.err (!%p716_p0)
}
 0x12e   : > { %s720_s4 = scalar_lea.hbm %s966_s25, 256  ;;  %s724_s5 = scalar_lea.hbm %s1016_s2, 512 }
 0x12f   : > { %p721_p1 = scmp.ne.s32.totalorder %s966_s25, %s720_s4  ;;  %p725_p9 = scmp.lt.s32.totalorder %s966_s25, %s1016_s2 }
 0x130   : > { %p726_p11 = scmp.lt.s32.totalorder %s724_s5, %s720_s4 }
 0x131   : > { %p722_p5 = pnand %p721_p1, %p1031_p12 }
 0x132   : > { %p727_p2 = por %p726_p11, %p725_p9 }
 0x133   : > { %p723_p7 = pneg %p722_p5 }
 0x135   : > { %p728_p3 = pnand %p727_p2, %p723_p7 }
 0x137   : > { %731 = shalt.err (!%p728_p3)
}
 0x138   : > { %s799_s26 = smov 128   ;;  %s800_s17 = smov 256  }
 0x139   : > { %s801_s19 = smov 8  }
 0x13a   : > { %559 = dma.vmem_to_hbm [thread:$0]  (%p1031_p12), %s961_s22, 256, %s966_s25, %s386_s28, %s799_s26, %s800_s17, %s801_s19  }
 0x13b PF: > { %s1032_s29 = sld [smem:[#allocation11_spill]]  ;;  %s416_s18 = sand.u32 1, %s770_s9  }
 0x13c   : > { %p1033_p13 = scmp.ne.s32.totalorder %s1026_s21, 0  ;;  %s417_s23 = scalar_lea.sflag [#allocation4], %s416_s18 }
 0x141   : > { %p1034_p4 = scmp.ge.s32.totalorder %s1032_s29, 2 }
 0x143   : > { %p570_p6 = pnand %p1034_p4, %p1033_p13 }
 0x145   : > { %p571_p8 = pneg %p570_p6 }
 0x147   : > { %765 = dma.done.wait (%p571_p8), %s417_s23, 256  }
 0x148   : > { %767 = vsyncadd (%p571_p8), %s417_s23, 4294967040  ;;  %s19_s24 = sadd.s32 1, %s1032_s29   ;;  %s1035_s9 = smov %s774_s10 }
 0x149   : > { %p16_p10 = scmp.ge.s32.totalorder %s19_s24, 4   ;;  %s1036_s10 = smov %s778_s11 }
 0x14a   : > { %s1037_s11 = smov %s919_s14  ;;  %s1038_s12 = smov %s786_s13 }
 0x14b   : > { %s1039_s13 = smov %s1042_s27  ;;  %s1040_s14 = smov %s19_s24 }
 0x14c   :  { %18 = sbr.rel (!%p16_p10) target bundleno = 7 (0x7), region = 79 }
 0x151   :  { %422 = vsyncpa [#allocation3], 1 }
 0x152   :  { %424 = vsyncpa [#allocation3 + $0x1], 1 }
 0x153   :  { %425 = vsyncpa [#allocation6], 1 }
 0x154   :  { %427 = vsyncpa [#allocation6 + $0x1], 1 }
 0x155   :  { %428 = vsyncpa [#allocation4], 1 }
 0x156   :  { %430 = vsyncpa [#allocation4 + $0x1], 1 }

</bundles_post_ra>
